<compile_context>
chip_gen: v7x
topology: tpu7x:2x2x1
jax: 0.10.0
libtpu: 0.0.40
codegen_flags: <defaults>
</compile_context>

<pallas_src>
import jax
import jax.numpy as jnp
from jax.experimental import pallas as pl
from jax.experimental.pallas import tpu as pltpu

_LANE = 128
_MAX_COLS = 2048
_MIN_PALLAS_BYTES = 2 << 20  # below this, let XLA fuse the elementwise math


def _qhardsigmoid_kernel(x_ref, o_ref):
    # add_scalar(x, 3) -> ReLU6 -> (QuantStub/DeQuantStub identity) -> * 1/6
    # TODO(synk): true int8 quantize/dequantize rounding is not emulated.
    x = x_ref[...].astype(jnp.float32)
    y = jnp.clip(x + 3.0, 0.0, 6.0) * (1.0 / 6.0)
    o_ref[...] = y.astype(o_ref.dtype)


def _hardsigmoid_jnp(x: jax.Array) -> jax.Array:
    xf = x.astype(jnp.float32)
    return (jnp.clip(xf + 3.0, 0.0, 6.0) * (1.0 / 6.0)).astype(x.dtype)


def _round_up(a: int, b: int) -> int:
    return -(-a // b) * b


def qhardsigmoid(x: jax.Array, *, min_pallas_bytes: int = _MIN_PALLAS_BYTES) -> jax.Array:
    """Elementwise hardsigmoid matching QHardsigmoid.forward (any shape)."""
    total = x.size
    itemsize = jnp.dtype(x.dtype).itemsize
    nbytes = total * itemsize

    # Tiny tensors (pallas_call overhead dominates) or ragged sizes that would
    # need a pad+slice (each a full-tensor HBM copy): use the fused XLA path.
    if nbytes < min_pallas_bytes or total % _LANE != 0:
        return _hardsigmoid_jnp(x)

    orig_shape = x.shape

    # Lane-dense 2D slab: largest power-of-two multiple of 128 dividing total,
    # capped so tile_r granularity stays useful.  Reshape of a contiguous
    # array is free; no padding is ever introduced on this path.
    cols = _LANE
    while cols * 2 <= _MAX_COLS and total % (cols * 2) == 0:
        cols *= 2
    rows = total // cols

    # Sublane packing: 8 rows/vreg for f32, 16 for bf16, 32 for int8/fp8.
    sublane = max(8, 32 // itemsize)

    if rows < sublane:
        # Single block equal to the full array dims (legal block shape).
        tile_r = rows
    else:
        # ~2 MiB per buffer: measured roofline flattens past this; bigger tiles
        # only eat VMEM and can collapse grid_r below 2 (hurting v7x megacore).
        target_tile_bytes = 2 * 1024 * 1024
        tile_r = max(
            sublane, (target_tile_bytes // (cols * itemsize)) // sublane * sublane
        )
        # Keep grid_r >= 2 so the "parallel" axis can shard across v7x's two
        # TensorCores; neutral on v5e/v6e.
        tile_r = min(tile_r, _round_up(pl.cdiv(rows, 2), sublane))

    # Non-divisible grid is legal: Pallas masks the final partial row-block.
    grid_r = pl.cdiv(rows, tile_r)

    x2d = x.reshape(rows, cols)  # free reshape of a contiguous array

    out2d = pl.pallas_call(
        _qhardsigmoid_kernel,
        out_shape=jax.ShapeDtypeStruct((rows, cols), x.dtype),
        grid=(grid_r,),
        in_specs=[pl.BlockSpec((tile_r, cols), lambda i: (i, 0))],
        out_specs=pl.BlockSpec((tile_r, cols), lambda i: (i, 0)),
        input_output_aliases={0: 0},  # same shape/dtype; allow in-place reuse
        compiler_params=pltpu.CompilerParams(
            dimension_semantics=("parallel",),  # megacore sharding on v7x
        ),
        cost_estimate=pl.CostEstimate(
            flops=4 * total,
            transcendentals=0,
            bytes_accessed=2 * rows * cols * itemsize,  # exact: no pad path
        ),
    )(x2d)

    return out2d.reshape(orig_shape)


if __name__ == "__main__":
    key = jax.random.PRNGKey(0)
    k1, k2 = jax.random.split(key)

    # Small NCHW activation implied by the module; force the Pallas path so the
    # kernel itself is exercised (default dispatch would use the jnp fallback).
    x_small = jax.random.normal(k1, (2, 4, 16, 16), dtype=jnp.float32) * 4.0
    out_small = jax.block_until_ready(qhardsigmoid(x_small, min_pallas_bytes=0))
    ref_small = jnp.clip(x_small + 3.0, 0.0, 6.0) * (1.0 / 6.0)
    assert out_small.shape == x_small.shape and out_small.dtype == x_small.dtype
    assert jnp.allclose(out_small, ref_small, atol=1e-6), "mismatch vs reference (small)"

    # Moderately sized activation through the default dispatch: no-pad fast
    # path, multi-block pipelined grid (grid_r == 2 -> megacore shardable).
    x_big = jax.random.normal(k2, (8, 32, 64, 64), dtype=jnp.float32) * 4.0
    out_big = jax.block_until_ready(qhardsigmoid(x_big))
    ref_big = jnp.clip(x_big + 3.0, 0.0, 6.0) * (1.0 / 6.0)
    assert out_big.shape == x_big.shape and out_big.dtype == x_big.dtype
    assert jnp.allclose(out_big, ref_big, atol=1e-6), "mismatch vs reference (big)"

    print("KERNEL_OK")
</pallas_src>

<mosaic_0001>
module attributes {stable_mosaic.version = 11 : i64} {
  func.func @_qhardsigmoid_kernel(%arg0: i32, %arg1: memref<1x2048xf32, #tpu.memory_space<vmem>>, %arg2: memref<1x2048xf32, #tpu.memory_space<vmem>>) attributes {dimension_semantics = [#tpu.dimension_semantics<parallel>], iteration_bounds = array<i64: 1>, scalar_prefetch = 0 : i64, scratch_operands = 0 : i64, tpu.core_type = #tpu.core_type<tc>, window_params = [{transform_indices = @transform_0, window_bounds = array<i64: 1, 2048>}, {transform_indices = @transform_1, window_bounds = array<i64: 1, 2048>}]} {
    %c0 = arith.constant 0 : index
    %c0_0 = arith.constant 0 : index
    %0 = vector.load %arg1[%c0, %c0_0] : memref<1x2048xf32, #tpu.memory_space<vmem>>, vector<1x2048xf32>
    %cst = arith.constant 3.000000e+00 : f32
    %1 = vector.broadcast %cst : f32 to vector<1x2048xf32>
    %2 = arith.addf %0, %1 : vector<1x2048xf32>
    %cst_1 = arith.constant 0.000000e+00 : f32
    %cst_2 = arith.constant 6.000000e+00 : f32
    %3 = vector.broadcast %cst_1 : f32 to vector<1x2048xf32>
    %4 = arith.maximumf %3, %2 : vector<1x2048xf32>
    %5 = vector.broadcast %cst_2 : f32 to vector<1x2048xf32>
    %6 = arith.minimumf %5, %4 : vector<1x2048xf32>
    %cst_3 = arith.constant 0.166666672 : f32
    %7 = vector.broadcast %cst_3 : f32 to vector<1x2048xf32>
    %8 = arith.mulf %6, %7 : vector<1x2048xf32>
    %c0_4 = arith.constant 0 : index
    %c0_5 = arith.constant 0 : index
    %9 = vector.load %arg2[%c0_4, %c0_5] : memref<1x2048xf32, #tpu.memory_space<vmem>>, vector<1x2048xf32>
    tpu.vector_store %arg2[%c0_4, %c0_5], %8 {strides = array<i32>} : memref<1x2048xf32, #tpu.memory_space<vmem>>, vector<1x2048xf32>,
    return
  }
  func.func @transform_0(%arg0: i32) -> (i32, i32) {
    %c0_i32 = arith.constant 0 : i32
    %c0_i32_0 = arith.constant 0 : i32
    return %arg0, %c0_i32 : i32, i32
  }
  func.func @transform_1(%arg0: i32) -> (i32, i32) {
    %c0_i32 = arith.constant 0 : i32
    %c0_i32_0 = arith.constant 0 : i32
    return %arg0, %c0_i32 : i32, i32
  }
}

</mosaic_0001>

<bundles_post_ra>
// kernel: tpu_custom_call.1
= control target key start
LH: loop header
LB: loop body
LE: loop exit
PB: predicated region body
PF: predicated region fallthrough
CT: control target
= control target key end

     0   :  { %6 = vsyncpa [#allocation3], 0  ;;  %s134_s0 = inlined_call_operand.hbm [shape: f32[1,2048], index: 0, kind: input, shape index: {}, may-alias: {0,1}]   ;;  %s135_s1 = inlined_call_operand.hbm [shape: f32[1,2048], index: 1, kind: output, shape index: {}, may-alias: {0,1}]  }
   0x1   :  { %7 = vsyncpa [#allocation4], 0  ;;  %s98_s6 = smov [#allocation2]   ;;  %s50_s10 = scalar_lea.hbm %s134_s0, 256 }
   0x2   :  { %s14_s7 = sshll.u32 %s98_s6, 4  ;;  %p51_p0 = scmp.ne.s32.totalorder %s134_s0, %s50_s10  ;;  %s15_s7 = int_to_ptr.vmem [resolvable:$true] %s14_s7 }
   0x3   :  { %p54_p1 = scmp.lt.u32.totalorder %s50_s10, %s134_s0 }
   0x5   :  { %p56_p2 = pnand %p54_p1, %p51_p0 }
   0x7   :  { %59 = shalt.err (!%p56_p2)
}
   0x8   :  { %s60_s15 = scalar_lea.vmem %s15_s7, 256  ;;  %p65_p4 = scmp.lt.s32.totalorder %s15_s7, %s15_s7 }
   0x9   :  { %p61_p3 = scmp.ne.s32.totalorder %s15_s7, %s60_s15  ;;  %p66_p5 = scmp.lt.s32.totalorder %s60_s15, %s60_s15 }
   0xb   :  { %p67_p6 = por %p66_p5, %p65_p4 }
   0xd   :  { %p68_p7 = pnand %p67_p6, %p61_p3 }
   0xf   :  { %71 = shalt.err (!%p68_p7)
}
  0x10   :  { %17 = dma.hbm_to_vmem [thread:$0]  %s134_s0, 256, %s15_s7, [#allocation3]  }
  0x11   :  { %94 = dma.done.wait [#allocation3], 256  }
  0x12   :  { %95 = vsyncadd [#allocation3], 4294967040  ;;  %v21_v0 = vld [vmem:[#allocation2] sm:$0xff]  ;;  %v22_v1 = vld [vmem:[#allocation2 + $0x8] sm:$0xff]  ;;  %s99_s18 = smov [#allocation5]  }
  0x13   :  { %v23_v2 = vadd.f32 3.0, %v21_v0  ;;  %v24_v3 = vadd.f32 3.0, %v22_v1  ;;  %s39_s19 = sshll.u32 %s99_s18, 4  ;;  %s40_s19 = int_to_ptr.vmem [resolvable:$true] %s39_s19 }
  0x14   :  { %s72_s20 = scalar_lea.vmem %s40_s19, 256  ;;  %p77_p9 = scmp.lt.s32.totalorder %s40_s19, %s40_s19 }
  0x15   :  { %v25_v4 = vmax.f32 %v23_v2, 0.0  ;;  %v26_v5 = vmax.f32 %v24_v3, 0.0  ;;  %p73_p8 = scmp.ne.s32.totalorder %s40_s19, %s72_s20  ;;  %p78_p10 = scmp.lt.s32.totalorder %s72_s20, %s72_s20 }
  0x17   :  { %v27_v6 = vmin.f32 %v25_v4, 6.0  ;;  %v28_v7 = vmin.f32 %v26_v5, 6.0  ;;  %p79_p11 = por %p78_p10, %p77_p9 }
  0x19   :  { %v29_v8 = vmul.f32 0.16666667, %v27_v6  ;;  %v30_v9 = vmul.f32 0.16666667, %v28_v7  ;;  %p80_p12 = pnand %p79_p11, %p73_p8 }
  0x1b   :  { %31 = vst [vmem:[#allocation5] sm:$0xff] %v29_v8  ;;  %32 = vst [vmem:[#allocation5 + $0x8] sm:$0xff] %v30_v9 }
  0x1c   :  { %83 = shalt.err (!%p80_p12)
}
  0x1d   :  { %s84_s22 = scalar_lea.hbm %s135_s1, 256 }
  0x1e   :  { %p85_p13 = scmp.ne.s32.totalorder %s135_s1, %s84_s22  ;;  %p88_p0 = scmp.lt.u32.totalorder %s84_s22, %s135_s1 }
  0x20   :  { %p90_p1 = pnand %p88_p0, %p85_p13 }
  0x22   :  { %93 = shalt.err (!%p90_p1)
}
  0x23   :  { %42 = dma.vmem_to_hbm [thread:$0]  %s40_s19, 256, %s135_s1, [#allocation4]  }
  0x24   :  { %96 = dma.done.wait [#allocation4], 256  }
  0x25   :  { %97 = vsyncadd [#allocation4], 4294967040 }
  0x26   :  { %46 = vsyncpa [#allocation3], 1 }
  0x27   :  { %47 = vsyncpa [#allocation4], 1 }

</bundles_post_ra>
